<compile_context>
chip_gen: v6e
topology: v6e:2x2x1
jax: 0.10.0
libtpu: 0.0.40
codegen_flags: <defaults>
</compile_context>

<pallas_src>
import jax
import jax.numpy as jnp
from jax.experimental import pallas as pl
from jax.experimental.pallas import tpu as pltpu


OUT_PAD = 8  # output lane width (q1 -> col 0, q2 -> col 1); equals full array dim


# -----------------------------------------------------------------------------
# Kernel: fused twin-Q forward for one batch tile.
# -----------------------------------------------------------------------------
def critic_kernel(s_ref, a_ref, w1s_ref, w1a_ref, w2_ref, w3_ref, bias_ref,
                  out_ref):
    bias = bias_ref[...]                     # [3, HP] f32: b1 | b2 | b3(first lanes)
    b1 = bias[0:1, :]
    b2 = bias[1:2, :]
    b3 = bias[2:3, :OUT_PAD]

    # Layer 1 (both heads at once), concat-free: sa@W1 == s@W1s + a@W1a.
    # bf16 operands, f32 accumulation on the MXU.
    h = (jnp.dot(s_ref[...], w1s_ref[...], preferred_element_type=jnp.float32)
         + jnp.dot(a_ref[...], w1a_ref[...], preferred_element_type=jnp.float32)
         + b1)
    h = jnp.maximum(h, 0.0).astype(jnp.bfloat16)

    # Layer 2 (block-diagonal packed weight keeps the two heads independent).
    h = jnp.dot(h, w2_ref[...], preferred_element_type=jnp.float32) + b2
    h = jnp.maximum(h, 0.0).astype(jnp.bfloat16)

    # Layer 3 -> [BM, OUT_PAD]; col 0 = q1, col 1 = q2, rest is zero padding.
    out = jnp.dot(h, w3_ref[...], preferred_element_type=jnp.float32) + b3
    out_ref[...] = out.astype(out_ref.dtype)


# -----------------------------------------------------------------------------
# Batch tiling: big tiles (amortize per-step overhead), grid >= 2 for large
# batches (v7x megacore), padded batch so a clean divisor always exists and the
# fallback can never produce a VMEM-busting single block.
# -----------------------------------------------------------------------------
def _round_up(x, m):
    return -(-x // m) * m


def _batch_tiling(batch):
    """Return (padded_batch, batch_tile)."""
    if batch <= 256:
        pb = _round_up(batch, 8)          # sublane-aligned single tile
        return pb, pb
    pb = _round_up(batch, 256)            # pad so large clean tiles always exist
    cap = min(8192, pb // 2)              # grid >= 2 -> both v7x TCs participate
    for bm in (8192, 4096, 2048, 1024, 512, 256):
        if bm <= cap and pb % bm == 0:
            return pb, bm
    return pb, 256


# -----------------------------------------------------------------------------
# Wrapper
# -----------------------------------------------------------------------------
def critic_forward(state, action, packed):
    batch, state_dim = state.shape
    action_dim = action.shape[1]
    hp = packed["w2"].shape[0]

    pb, bm = _batch_tiling(batch)
    if pb != batch:
        pad = pb - batch
        state = jnp.pad(state, ((0, pad), (0, 0)))
        action = jnp.pad(action, ((0, pad), (0, 0)))

    s16 = state.astype(jnp.bfloat16)      # halve activation DMA bytes
    a16 = action.astype(jnp.bfloat16)

    grid = (pb // bm,)
    const = lambda i: (0, 0)              # weights resident across batch tiles

    in_dim = state_dim + action_dim
    flops = 2 * pb * (in_dim * hp + hp * hp + hp * OUT_PAD)
    param_bytes = sum(p.size * p.dtype.itemsize for p in packed.values())
    bytes_accessed = (s16.size * 2 + a16.size * 2        # bf16 inputs
                      + pb * OUT_PAD * 4                  # f32 output
                      + param_bytes)

    out = pl.pallas_call(
        critic_kernel,
        out_shape=jax.ShapeDtypeStruct((pb, OUT_PAD), jnp.float32),
        grid=grid,
        in_specs=[
            pl.BlockSpec((bm, state_dim), lambda i: (i, 0)),
            pl.BlockSpec((bm, action_dim), lambda i: (i, 0)),
            pl.BlockSpec((state_dim, hp), const),
            pl.BlockSpec((action_dim, hp), const),
            pl.BlockSpec((hp, hp), const),
            pl.BlockSpec((hp, OUT_PAD), const),
            pl.BlockSpec((3, hp), const),
        ],
        out_specs=pl.BlockSpec((bm, OUT_PAD), lambda i: (i, 0)),
        compiler_params=pltpu.CompilerParams(
            dimension_semantics=("parallel",)),
        cost_estimate=pl.CostEstimate(
            flops=flops, transcendentals=0, bytes_accessed=bytes_accessed),
    )(s16, a16,
      packed["w1s"], packed["w1a"], packed["w2"], packed["w3"], packed["bias"])

    q = out[:batch, :2]                   # single slice of the real columns
    return q[:, 0:1], q[:, 1:2]


# -----------------------------------------------------------------------------
# Parameter init (matches nn.Linear + weights_init_: xavier_uniform weights,
# zero biases; weights stored as [in, out]) and one-time packing into the
# fused / padded / bf16 layout consumed by the kernel.
# -----------------------------------------------------------------------------
def xavier_uniform(key, fan_in, fan_out):
    limit = jnp.sqrt(6.0 / (fan_in + fan_out))
    return jax.random.uniform(key, (fan_in, fan_out), jnp.float32, -limit, limit)


def init_critic_params(key, state_dim, action_dim, hidden_dim):
    in_dim = state_dim + action_dim
    keys = jax.random.split(key, 6)
    return {
        "w1_q1": xavier_uniform(keys[0], in_dim, hidden_dim),
        "b1_q1": jnp.zeros((1, hidden_dim), jnp.float32),
        "w2_q1": xavier_uniform(keys[1], hidden_dim, hidden_dim),
        "b2_q1": jnp.zeros((1, hidden_dim), jnp.float32),
        "w3_q1": xavier_uniform(keys[2], hidden_dim, 1),
        "b3_q1": jnp.zeros((1, 1), jnp.float32),
        "w1_q2": xavier_uniform(keys[3], in_dim, hidden_dim),
        "b1_q2": jnp.zeros((1, hidden_dim), jnp.float32),
        "w2_q2": xavier_uniform(keys[4], hidden_dim, hidden_dim),
        "b2_q2": jnp.zeros((1, hidden_dim), jnp.float32),
        "w3_q2": xavier_uniform(keys[5], hidden_dim, 1),
        "b3_q2": jnp.zeros((1, 1), jnp.float32),
    }


def pack_critic_params(params, state_dim, action_dim, hidden_dim):
    """One-time packing of raw (PyTorch-layout) params into the fused layout."""
    h = hidden_dim
    # Keep HP at the 128-lane multiple of 2*hidden (do NOT round up to 256 for
    # the wider v6e/v7x MXU: w2 would quadruple in DMA bytes for zero benefit).
    hp = max(128, _round_up(2 * h, 128))

    # Layer 1: heads stacked along output dim, split by input (state | action).
    w1 = jnp.zeros((state_dim + action_dim, hp), jnp.float32)
    w1 = w1.at[:, :h].set(params["w1_q1"]).at[:, h:2 * h].set(params["w1_q2"])
    w1s = w1[:state_dim, :].astype(jnp.bfloat16)
    w1a = w1[state_dim:, :].astype(jnp.bfloat16)

    # Layer 2: block-diagonal.
    w2 = jnp.zeros((hp, hp), jnp.float32)
    w2 = w2.at[:h, :h].set(params["w2_q1"]).at[h:2 * h, h:2 * h].set(params["w2_q2"])
    w2 = w2.astype(jnp.bfloat16)

    # Layer 3: col 0 = q1 head, col 1 = q2 head.
    w3 = jnp.zeros((hp, OUT_PAD), jnp.float32)
    w3 = w3.at[:h, 0:1].set(params["w3_q1"]).at[h:2 * h, 1:2].set(params["w3_q2"])
    w3 = w3.astype(jnp.bfloat16)

    # All biases merged into one [3, HP] f32 array (row 0 = b1, 1 = b2,
    # 2 = b3 folded into the first OUT_PAD lanes).
    bias = jnp.zeros((3, hp), jnp.float32)
    bias = bias.at[0, :h].set(params["b1_q1"][0]).at[0, h:2 * h].set(params["b1_q2"][0])
    bias = bias.at[1, :h].set(params["b2_q1"][0]).at[1, h:2 * h].set(params["b2_q2"][0])
    bias = bias.at[2, 0].set(params["b3_q1"][0, 0]).at[2, 1].set(params["b3_q2"][0, 0])

    return {"w1s": w1s, "w1a": w1a, "w2": w2, "w3": w3, "bias": bias}


# -----------------------------------------------------------------------------
# Pure-JAX references
# -----------------------------------------------------------------------------
def _head_ref(sa, w1, b1, w2, b2, w3, b3, cast):
    h = jnp.maximum(cast(sa) @ cast(w1) + b1, 0.0)
    h = jnp.maximum(cast(h) @ cast(w2) + b2, 0.0)
    return cast(h) @ cast(w3) + b3


def reference_forward(state, action, params, *, bf16_operands):
    """Plain-JAX forward; with bf16_operands=True mirrors the kernel's
    bf16-operand / f32-accumulate arithmetic."""
    if bf16_operands:
        cast = lambda x: x.astype(jnp.bfloat16).astype(jnp.float32)
    else:
        cast = lambda x: x
    sa = jnp.concatenate([state, action], axis=1)
    q1 = _head_ref(sa, params["w1_q1"], params["b1_q1"], params["w2_q1"],
                   params["b2_q1"], params["w3_q1"], params["b3_q1"], cast)
    q2 = _head_ref(sa, params["w1_q2"], params["b1_q2"], params["w2_q2"],
                   params["b2_q2"], params["w3_q2"], params["b3_q2"], cast)
    return q1, q2


if __name__ == "__main__":
    # Small shapes consistent with the module: batch=8, state_dim=24,
    # action_dim=8, hidden_dim=32.
    batch, state_dim, action_dim, hidden_dim = 8, 24, 8, 32

    key = jax.random.PRNGKey(0)
    k_state, k_action, k_params = jax.random.split(key, 3)

    state = jax.random.normal(k_state, (batch, state_dim), jnp.float32)
    action = jax.random.normal(k_action, (batch, action_dim), jnp.float32)
    params = init_critic_params(k_params, state_dim, action_dim, hidden_dim)
    packed = pack_critic_params(params, state_dim, action_dim, hidden_dim)

    q1, q2 = critic_forward(state, action, packed)
    q1 = jax.block_until_ready(q1)
    q2 = jax.block_until_ready(q2)
    assert q1.shape == (batch, 1) and q2.shape == (batch, 1)

    # Tight check against a reference that mirrors the kernel's bf16 operands.
    r1, r2 = reference_forward(state, action, params, bf16_operands=True)
    assert jnp.allclose(q1, r1, atol=1e-2, rtol=1e-2)
    assert jnp.allclose(q2, r2, atol=1e-2, rtol=1e-2)

    # Loose sanity check against the exact f32 module semantics.
    f1, f2 = reference_forward(state, action, params, bf16_operands=False)
    assert jnp.allclose(q1, f1, atol=5e-2, rtol=5e-2)
    assert jnp.allclose(q2, f2, atol=5e-2, rtol=5e-2)

    print("KERNEL_OK")
</pallas_src>

<mosaic_0001>
module attributes {stable_mosaic.version = 11 : i64} {
  func.func @critic_kernel(%arg0: i32, %arg1: memref<8x24xbf16, #tpu.memory_space<vmem>>, %arg2: memref<8x8xbf16, #tpu.memory_space<vmem>>, %arg3: memref<24x128xbf16, #tpu.memory_space<vmem>>, %arg4: memref<8x128xbf16, #tpu.memory_space<vmem>>, %arg5: memref<128x128xbf16, #tpu.memory_space<vmem>>, %arg6: memref<128x8xbf16, #tpu.memory_space<vmem>>, %arg7: memref<3x128xf32, #tpu.memory_space<vmem>>, %arg8: memref<8x8xf32, #tpu.memory_space<vmem>>) attributes {dimension_semantics = [#tpu.dimension_semantics<parallel>], iteration_bounds = array<i64: 1>, scalar_prefetch = 0 : i64, scratch_operands = 0 : i64, tpu.core_type = #tpu.core_type<tc>, window_params = [{transform_indices = @transform_0, window_bounds = array<i64: 8, 24>}, {transform_indices = @transform_1, window_bounds = array<i64: 8, 8>}, {pipeline_mode = #tpu.pipeline_mode<synchronous>, transform_indices = @transform_2, window_bounds = array<i64: 24, 128>}, {pipeline_mode = #tpu.pipeline_mode<synchronous>, transform_indices = @transform_3, window_bounds = array<i64: 8, 128>}, {pipeline_mode = #tpu.pipeline_mode<synchronous>, transform_indices = @transform_4, window_bounds = array<i64: 128, 128>}, {pipeline_mode = #tpu.pipeline_mode<synchronous>, transform_indices = @transform_5, window_bounds = array<i64: 128, 8>}, {pipeline_mode = #tpu.pipeline_mode<synchronous>, transform_indices = @transform_6, window_bounds = array<i64: 3, 128>}, {transform_indices = @transform_7, window_bounds = array<i64: 8, 8>}]} {
    %c0 = arith.constant 0 : index
    %c0_0 = arith.constant 0 : index
    %0 = vector.load %arg7[%c0, %c0_0] : memref<3x128xf32, #tpu.memory_space<vmem>>, vector<3x128xf32>
    %1 = vector.extract_strided_slice %0 {offsets = [0, 0], sizes = [1, 128], strides = [1, 1]} : vector<3x128xf32> to vector<1x128xf32>
    %2 = vector.extract_strided_slice %0 {offsets = [1, 0], sizes = [1, 128], strides = [1, 1]} : vector<3x128xf32> to vector<1x128xf32>
    %3 = vector.extract_strided_slice %0 {offsets = [2, 0], sizes = [1, 8], strides = [1, 1]} : vector<3x128xf32> to vector<1x8xf32>
    %c0_1 = arith.constant 0 : index
    %c0_2 = arith.constant 0 : index
    %4 = vector.load %arg1[%c0_1, %c0_2] : memref<8x24xbf16, #tpu.memory_space<vmem>>, vector<8x24xbf16>
    %c0_3 = arith.constant 0 : index
    %c0_4 = arith.constant 0 : index
    %5 = vector.load %arg3[%c0_3, %c0_4] : memref<24x128xbf16, #tpu.memory_space<vmem>>, vector<24x128xbf16>
    %cst = arith.constant dense<0.000000e+00> : vector<8x128xf32>
    %6 = tpu.matmul %4, %5, %cst {dimension_numbers = #tpu.dot_dimension_numbers<[1], [0], [0], [1], [0, 0, 1, 1], [], []>} : vector<8x24xbf16>, vector<24x128xbf16>, vector<8x128xf32> -> vector<8x128xf32>
    %c0_5 = arith.constant 0 : index
    %c0_6 = arith.constant 0 : index
    %7 = vector.load %arg2[%c0_5, %c0_6] : memref<8x8xbf16, #tpu.memory_space<vmem>>, vector<8x8xbf16>
    %c0_7 = arith.constant 0 : index
    %c0_8 = arith.constant 0 : index
    %8 = vector.load %arg4[%c0_7, %c0_8] : memref<8x128xbf16, #tpu.memory_space<vmem>>, vector<8x128xbf16>
    %cst_9 = arith.constant dense<0.000000e+00> : vector<8x128xf32>
    %9 = tpu.matmul %7, %8, %cst_9 {dimension_numbers = #tpu.dot_dimension_numbers<[1], [0], [0], [1], [0, 0, 1, 1], [], []>} : vector<8x8xbf16>, vector<8x128xbf16>, vector<8x128xf32> -> vector<8x128xf32>
    %10 = arith.addf %6, %9 : vector<8x128xf32>
    %11 = vector.broadcast %1 : vector<1x128xf32> to vector<8x128xf32>
    %12 = arith.addf %10, %11 : vector<8x128xf32>
    %cst_10 = arith.constant 0.000000e+00 : f32
    %13 = vector.broadcast %cst_10 : f32 to vector<8x128xf32>
    %14 = arith.maximumf %12, %13 : vector<8x128xf32>
    %15 = arith.truncf %14 : vector<8x128xf32> to vector<8x128xbf16>
    %c0_11 = arith.constant 0 : index
    %c0_12 = arith.constant 0 : index
    %16 = vector.load %arg5[%c0_11, %c0_12] : memref<128x128xbf16, #tpu.memory_space<vmem>>, vector<128x128xbf16>
    %cst_13 = arith.constant dense<0.000000e+00> : vector<8x128xf32>
    %17 = tpu.matmul %15, %16, %cst_13 {dimension_numbers = #tpu.dot_dimension_numbers<[1], [0], [0], [1], [0, 0, 1, 1], [], []>} : vector<8x128xbf16>, vector<128x128xbf16>, vector<8x128xf32> -> vector<8x128xf32>
    %18 = vector.broadcast %2 : vector<1x128xf32> to vector<8x128xf32>
    %19 = arith.addf %17, %18 : vector<8x128xf32>
    %cst_14 = arith.constant 0.000000e+00 : f32
    %20 = vector.broadcast %cst_14 : f32 to vector<8x128xf32>
    %21 = arith.maximumf %19, %20 : vector<8x128xf32>
    %22 = arith.truncf %21 : vector<8x128xf32> to vector<8x128xbf16>
    %c0_15 = arith.constant 0 : index
    %c0_16 = arith.constant 0 : index
    %23 = vector.load %arg6[%c0_15, %c0_16] : memref<128x8xbf16, #tpu.memory_space<vmem>>, vector<128x8xbf16>
    %cst_17 = arith.constant dense<0.000000e+00> : vector<8x8xf32>
    %24 = tpu.matmul %22, %23, %cst_17 {dimension_numbers = #tpu.dot_dimension_numbers<[1], [0], [0], [1], [0, 0, 1, 1], [], []>} : vector<8x128xbf16>, vector<128x8xbf16>, vector<8x8xf32> -> vector<8x8xf32>
    %25 = vector.broadcast %3 : vector<1x8xf32> to vector<8x8xf32>
    %26 = arith.addf %24, %25 : vector<8x8xf32>
    %c0_18 = arith.constant 0 : index
    %c0_19 = arith.constant 0 : index
    %27 = vector.load %arg8[%c0_18, %c0_19] : memref<8x8xf32, #tpu.memory_space<vmem>>, vector<8x8xf32>
    tpu.vector_store %arg8[%c0_18, %c0_19], %26 {strides = array<i32>} : memref<8x8xf32, #tpu.memory_space<vmem>>, vector<8x8xf32>,
    return
  }
  func.func @transform_0(%arg0: i32) -> (i32, i32) {
    %c0_i32 = arith.constant 0 : i32
    %c0_i32_0 = arith.constant 0 : i32
    return %arg0, %c0_i32 : i32, i32
  }
  func.func @transform_1(%arg0: i32) -> (i32, i32) {
    %c0_i32 = arith.constant 0 : i32
    %c0_i32_0 = arith.constant 0 : i32
    return %arg0, %c0_i32 : i32, i32
  }
  func.func @transform_2(%arg0: i32) -> (i32, i32) {
    %c0_i32 = arith.constant 0 : i32
    %c0_i32_0 = arith.constant 0 : i32
    %c0_i32_1 = arith.constant 0 : i32
    return %c0_i32, %c0_i32_0 : i32, i32
  }
  func.func @transform_3(%arg0: i32) -> (i32, i32) {
    %c0_i32 = arith.constant 0 : i32
    %c0_i32_0 = arith.constant 0 : i32
    %c0_i32_1 = arith.constant 0 : i32
    return %c0_i32, %c0_i32_0 : i32, i32
  }
  func.func @transform_4(%arg0: i32) -> (i32, i32) {
    %c0_i32 = arith.constant 0 : i32
    %c0_i32_0 = arith.constant 0 : i32
    %c0_i32_1 = arith.constant 0 : i32
    return %c0_i32, %c0_i32_0 : i32, i32
  }
  func.func @transform_5(%arg0: i32) -> (i32, i32) {
    %c0_i32 = arith.constant 0 : i32
    %c0_i32_0 = arith.constant 0 : i32
    %c0_i32_1 = arith.constant 0 : i32
    return %c0_i32, %c0_i32_0 : i32, i32
  }
  func.func @transform_6(%arg0: i32) -> (i32, i32) {
    %c0_i32 = arith.constant 0 : i32
    %c0_i32_0 = arith.constant 0 : i32
    %c0_i32_1 = arith.constant 0 : i32
    return %c0_i32, %c0_i32_0 : i32, i32
  }
  func.func @transform_7(%arg0: i32) -> (i32, i32) {
    %c0_i32 = arith.constant 0 : i32
    %c0_i32_0 = arith.constant 0 : i32
    return %arg0, %c0_i32 : i32, i32
  }
}

</mosaic_0001>

<bundles_post_ra>
// kernel: tpu_custom_call.1
= control target key start
LH: loop header
LB: loop body
LE: loop exit
PB: predicated region body
PF: predicated region fallthrough
CT: control target
= control target key end

     0   :  { %12 = vsyncpa [#allocation3], 0  ;;  %s770_s0 = inlined_call_operand.vmem [shape: bf16[8,24], index: 0, kind: input, shape index: {}]   ;;  %s771_s1 = inlined_call_operand.vmem [shape: bf16[8,8], index: 1, kind: input, shape index: {}]   ;;  %s772_s2 = inlined_call_operand.hbm [shape: bf16[24,128], index: 2, kind: input, shape index: {}]   ;;  %s773_s3 = inlined_call_operand.hbm [shape: bf16[8,128], index: 3, kind: input, shape index: {}]   ;;  %s774_s4 = inlined_call_operand.vmem [shape: bf16[128,128], index: 4, kind: input, shape index: {}]   ;;  %s775_s5 = inlined_call_operand.vmem [shape: bf16[128,8], index: 5, kind: input, shape index: {}]   ;;  %s776_s6 = inlined_call_operand.hbm [shape: f32[3,128], index: 6, kind: input, shape index: {}]   ;;  %s777_s7 = inlined_call_operand.hbm [shape: f32[8,8], index: 7, kind: output, shape index: {}]  }
   0x1   :  { %13 = vsyncpa [#allocation6], 0 }
   0x2   :  { %14 = vsyncpa [#allocation4], 0  ;;  %s627_s24 = smov [#allocation5]   ;;  %s628_s26 = smov [#allocation2]  }
   0x3   :  { %s37_s25 = sshll.u32 %s627_s24, 4  ;;  %s24_s27 = sshll.u32 %s628_s26, 4  ;;  %s38_s25 = int_to_ptr.vmem [resolvable:$true] %s37_s25  ;;  %s25_s27 = int_to_ptr.vmem [resolvable:$true] %s24_s27 }
   0x4   :  { %s549_s28 = scalar_lea.vmem %s38_s25, 64  ;;  %p554_p1 = scmp.lt.s32.totalorder %s38_s25, %s38_s25 }
   0x5   :  { %p550_p0 = scmp.ne.s32.totalorder %s38_s25, %s549_s28  ;;  %p555_p2 = scmp.lt.s32.totalorder %s549_s28, %s549_s28 }
   0x7   :  { %p556_p3 = por %p555_p2, %p554_p1 }
   0x9   :  { %p557_p4 = pnand %p556_p3, %p550_p0 }
   0xb   :  { %560 = shalt.err (!%p557_p4)
}
   0xc   :  { %40 = dma.hbm_to_vmem [thread:$0]  %s773_s3, 64, %s38_s25, [#allocation6]  }
   0xd   :  { %s569_s8 = scalar_lea.vmem %s25_s27, 192  ;;  %p574_p6 = scmp.lt.s32.totalorder %s25_s27, %s25_s27 }
   0xe   :  { %p570_p5 = scmp.ne.s32.totalorder %s25_s27, %s569_s8  ;;  %p575_p7 = scmp.lt.s32.totalorder %s569_s8, %s569_s8 }
  0x10   :  { %p576_p8 = por %p575_p7, %p574_p6 }
  0x12   :  { %p577_p9 = pnand %p576_p8, %p570_p5 }
  0x14   :  { %580 = shalt.err (!%p577_p9)
}
  0x15   :  { %s629_s9 = smov 64   ;;  %s630_s10 = smov 4  }
  0x16   :  { %30 = dma.hbm_to_vmem [thread:$0]  %s772_s2, 192, %s25_s27, [#allocation3], %s629_s9, %s629_s9, %s630_s10  }
  0x17   :  { %s631_s13 = smov [#allocation7]  }
  0x18   :  { %s51_s14 = sshll.u32 %s631_s13, 4  ;;  %s52_s14 = int_to_ptr.vmem [resolvable:$true] %s51_s14 }
  0x19   :  { %s589_s15 = scalar_lea.vmem %s52_s14, 64  ;;  %p594_p11 = scmp.lt.s32.totalorder %s52_s14, %s52_s14 }
  0x1a   :  { %p590_p10 = scmp.ne.s32.totalorder %s52_s14, %s589_s15  ;;  %p595_p12 = scmp.lt.s32.totalorder %s589_s15, %s589_s15 }
  0x1c   :  { %p596_p13 = por %p595_p12, %p594_p11 }
  0x1e   :  { %p597_p0 = pnand %p596_p13, %p590_p10 }
  0x20   :  { %600 = shalt.err (!%p597_p0)
}
  0x21   :  { %54 = dma.hbm_to_vmem [thread:$0]  %s776_s6, 64, %s52_s14, [#allocation6]  }
  0x22   :  { %621 = dma.done.wait [#allocation3], 192  }
  0x23   :  { %622 = vsyncadd [#allocation3], 4294967104 }
  0x24   :  { %623 = dma.done.wait [#allocation6], 128  }
  0x25   :  { %624 = vsyncadd [#allocation6], 4294967168  ;;  %v632_v0 = vmov 0.0   ;;  %vm633_vm0 = vmmov 0   ;;  %vm76_vm1 = vcmask 1043456   ;;  %vm72_vm2 = vcmask 64512  }
  0x26   :  { %461 = vmatprep.subr.bf16.mxu0 %v632_v0  ;;  %467 = vmatprep.subr.bf16.mxu1 %v632_v0  ;;  %v71_v1 = vld [vmem:[#allocation5] sm:$0xf]  ;;  %v523_v2 = vld [vmem:[#allocation2 + $0x8] ss:$0 sps:$4 sm:$0xff]   ;;  %v70_v4 = vld [vmem:[%s771_s1] sm:$0xf]  ;;  %v176_v22 = vlaneseq }
  0x27   :  { %463 = vmatprep.mubr.msk.bf16.mxu0 %vm633_vm0, %v632_v0  ;;  %471 = vmatprep.mubr.msk.bf16.mxu1 %vm633_vm0, %v632_v0  ;;  %v78_v3 = vsel %vm76_vm1, %v71_v1, 0  ;;  %v134_v5 = vsel %vm76_vm1, %v523_v2, 0  ;;  %v524_v6 = vld [vmem:[#allocation2] sm:$0xff]   ;;  %v525_v7 = vld [vmem:[%s774_s4 + $0x38] sm:$0xff]   ;;  %vm129_vm3 = vcmask 195584   ;;  %v526_v9 = vld [vmem:[%s774_s4 + $0x30] sm:$0xff]  }
  0x28   :  { %462 = vmatpush3.bf16.msra.mxu0 %v78_v3  ;;  %468 = vmatpush3.bf16.msra.mxu1 %v134_v5  ;;  %v66_v8 = vld [vmem:[%s770_s0] sm:$0xf]  ;;  %v527_v10 = vld [vmem:[%s774_s4 + $0x28] sm:$0xff]   ;;  %v529_v12 = vld [vmem:[%s774_s4 + $0x18] sm:$0xff]   ;;  %v177_v23 = vshrl.u32 %v176_v22, 7  ;;  %s634_s21 = smov [#allocation8]  }
  0x29   :  { %475 = vmatprep.subr.bf16.mxu0 %v632_v0  ;;  %469 = vmatprep.subr.bf16.mxu1 %v632_v0  ;;  %v528_v11 = vld [vmem:[%s774_s4 + $0x20] sm:$0xff]   ;;  %v530_v13 = vld [vmem:[%s774_s4 + $0x10] sm:$0xff]   ;;  %v531_v14 = vld [vmem:[%s774_s4 + $0x8] sm:$0xff]   ;;  %s408_s22 = sshll.u32 %s634_s21, 4  ;;  %s409_s22 = int_to_ptr.vmem [resolvable:$true] %s408_s22 }
  0x2a   :  { %v532_v15 = vld [vmem:[%s774_s4] sm:$0xff]   ;;  %v533_v16 = vld [vmem:[%s775_s5 + $0x38] sm:$0xff]   ;;  %v534_v17 = vld [vmem:[%s775_s5 + $0x30] sm:$0xff]   ;;  %v178_v25 = vsub.s32 0, %v177_v23  ;;  %v201_v41 = vsub.s32 1, %v177_v23  ;;  %v311_v50 = vsub.s32 2, %v177_v23  ;;  %p606_p2 = scmp.lt.s32.totalorder %s409_s22, %s409_s22 }
  0x2b   :  { %464 = vmatmul.mubr.msk.bf16.vlgmr.msra.gmra.mxu0 %vm72_vm2, %v70_v4  ;;  %v535_v18 = vld [vmem:[%s775_s5 + $0x28] sm:$0xff]   ;;  %v536_v19 = vld [vmem:[%s775_s5 + $0x20] sm:$0xff]   ;;  %v537_v20 = vld [vmem:[%s775_s5 + $0x18] sm:$0xff]  }
  0x2c   :  { %476 = vmatpush3.bf16.msra.mxu0 %v525_v7  ;;  %491 = vmatprep.mubr.msk.bf16.mxu0 %vm633_vm0, %v632_v0  ;;  %v538_v21 = vld [vmem:[%s775_s5 + $0x10] sm:$0xff]   ;;  %v539_v39 = vld [vmem:[%s775_s5 + $0x8] sm:$0xff]   ;;  %v540_v40 = vld [vmem:[%s775_s5] sm:$0xff]   ;;  %s601_s5 = scalar_lea.vmem %s409_s22, 128 }
  0x2d   :  { %470 = vmatpush3.bf16.msra.mxu1 %v524_v6  ;;  %477 = vmatprep.subr.bf16.mxu0 %v632_v0  ;;  %v65_v26 = vld [vmem:[#allocation7] sm:$0x7]  ;;  %p602_p1 = scmp.ne.s32.totalorder %s409_s22, %s601_s5  ;;  %p607_p3 = scmp.lt.s32.totalorder %s601_s5, %s601_s5 }
  0x2e   :  { %495 = vmatprep.subr.bf16.mxu1 %v632_v0  ;;  %v179_v29 = vrot.slane %v65_v26, %v178_v25  ;;  %v202_v42 = vrot.slane %v65_v26, %v201_v41  ;;  %v312_v51 = vrot.slane %v65_v26, %v311_v50 }
  0x2f   :  { %p608_p4 = por %p607_p3, %p606_p2 }
  0x30   :  { %472 = vmatmul.mubr.msk.bf16.vlgmr.msra.gmra.mxu1 %vm129_vm3, %v66_v8  ;;  %478 = vmatpush3.bf16.msra.mxu0 %v526_v9 }
  0x31   :  { %479 = vmatprep.subr.bf16.mxu0 %v632_v0  ;;  %511 = vmatprep.mubr.msk.bf16.mxu1 %vm633_vm0, %v632_v0  ;;  %p609_p5 = pnand %p608_p4, %p602_p1 }
  0x32   :  { %496 = vmatpush3.bf16.msra.mxu1 %v533_v16 }
  0x33   :  { %497 = vmatprep.subr.bf16.mxu1 %v632_v0 }
  0x34   :  { %480 = vmatpush3.bf16.msra.mxu0 %v527_v10 }
  0x35   :  { %481 = vmatprep.subr.bf16.mxu0 %v632_v0 }
  0x36   :  { %498 = vmatpush3.bf16.msra.mxu1 %v534_v17 }
  0x37   :  { %499 = vmatprep.subr.bf16.mxu1 %v632_v0 }
  0x38   :  { %482 = vmatpush3.bf16.msra.mxu0 %v528_v11 }
  0x39   :  { %483 = vmatprep.subr.bf16.mxu0 %v632_v0 }
  0x3a   :  { %500 = vmatpush3.bf16.msra.mxu1 %v535_v18 }
  0x3b   :  { %501 = vmatprep.subr.bf16.mxu1 %v632_v0 }
  0x3c   :  { %484 = vmatpush3.bf16.msra.mxu0 %v529_v12 }
  0x3d   :  { %485 = vmatprep.subr.bf16.mxu0 %v632_v0 }
  0x3e   :  { %502 = vmatpush3.bf16.msra.mxu1 %v536_v19 }
  0x3f   :  { %503 = vmatprep.subr.bf16.mxu1 %v632_v0 }
  0x40   :  { %486 = vmatpush3.bf16.msra.mxu0 %v530_v13 }
  0x41   :  { %487 = vmatprep.subr.bf16.mxu0 %v632_v0 }
  0x42   :  { %504 = vmatpush3.bf16.msra.mxu1 %v537_v20 }
  0x43   :  { %505 = vmatprep.subr.bf16.mxu1 %v632_v0 }
  0x44   :  { %488 = vmatpush3.bf16.msra.mxu0 %v531_v14 }
  0x45   :  { %489 = vmatprep.subr.bf16.mxu0 %v632_v0 }
  0x46   :  { %506 = vmatpush3.bf16.msra.mxu1 %v538_v21 }
  0x47   :  { %507 = vmatprep.subr.bf16.mxu1 %v632_v0 }
  0x48   :  { %490 = vmatpush3.bf16.msra.mxu0 %v532_v15 }
  0x4a   :  { %508 = vmatpush3.bf16.msra.mxu1 %v539_v39 }
  0x4b   :  { %509 = vmatprep.subr.bf16.mxu1 %v632_v0 }
  0x4e   :  { %510 = vmatpush3.bf16.msra.mxu1 %v540_v40 }
  0xeb   :  { %v114_v24 = vpop.f32.mrf.mxu0 }
  0xed   :  { %v465_v27 = vpop.f32.mrf.mxu0 }
  0xef   :  { %v117_v28 = vpop.f32.mrf.mxu0 }
  0xf0   :  { %v170_v30 = vpop.f32.mrf.mxu1 }
  0xf1   :  { %v466_v31 = vpop.f32.mrf.mxu0  ;;  %v171_v32 = vadd.f32 %v170_v30, %v114_v24 }
  0xf2   :  { %v473_v33 = vpop.f32.mrf.mxu1 }
  0xf3   :  { %v180_v34 = vadd.f32 %v179_v29, %v171_v32 }
  0xf4   :  { %v173_v35 = vpop.f32.mrf.mxu1 }
  0xf5   :  { %v181_v36 = vmax.f32 %v180_v34, 0.0 }
  0xf6   :  { %v474_v37 = vpop.f32.mrf.mxu1 }
  0xf7   :  { %v182_v38 = vpack.c.bf16 %v181_v36, %v181_v36 }
  0xf9   :  { %492 = vmatmul.mubr.bf16.vlgmr.msra.gmra.mxu0 %v182_v38 }
 0x1b9   :  { %v285_v43 = vpop.f32.mrf.mxu0 }
 0x1ba   :  { %v286_v44 = vadd.f32 %v285_v43, %v202_v42 }
 0x1bb   :  { %v493_v45 = vpop.f32.mrf.mxu0 }
 0x1bc   :  { %v291_v46 = vmax.f32 %v286_v44, 0.0 }
 0x1bd   :  { %v288_v47 = vpop.f32.mrf.mxu0 }
 0x1be   :  { %v292_v48 = vpack.c.bf16 %v291_v46, %v291_v46 }
 0x1bf   :  { %v494_v49 = vpop.f32.mrf.mxu0 }
 0x1c0   :  { %512 = vmatmul.mubr.bf16.vlgmr.msra.gmra.mxu1 %v292_v48 }
 0x280   :  { %v395_v52 = vpop.f32.mrf.mxu1 }
 0x281   :  { %v396_v53 = vadd.f32 %v395_v52, %v312_v51 }
 0x282   :  { %v513_v54 = vpop.f32.mrf.mxu1 }
 0x283   :  { %401 = vst.msk [vmem:[#allocation8] sm:$0xff] %vm72_vm2, %v396_v53 }
 0x284   :  { %v398_v55 = vpop.f32.mrf.mxu1 }
 0x285   :  { %612 = shalt.err (!%p609_p5)
}
 0x286   :  { %411 = dma.vmem_to_hbm [thread:$0]  %s409_s22, 128, %s777_s7, [#allocation4]   ;;  %v514_v56 = vpop.f32.mrf.mxu1 }
 0x287   :  { %625 = dma.done.wait [#allocation4], 128  }
 0x288   :  { %626 = vsyncadd [#allocation4], 4294967168 }
 0x289   :  { %415 = vsyncpa [#allocation3], 1 }
 0x28a   :  { %416 = vsyncpa [#allocation6], 1 }
 0x28b   :  { %417 = vsyncpa [#allocation4], 1 }

</bundles_post_ra>
